<compile_context>
chip_gen: v6e
topology: v6e:2x2x1
jax: 0.10.0
libtpu: 0.0.40
codegen_flags: <defaults>
</compile_context>

<pallas_src>
import math
from functools import partial

import jax
import jax.numpy as jnp
from jax.experimental import pallas as pl
from jax.experimental.pallas import tpu as pltpu


def _replicate_lanes(x, n_rep):
    """Replicate x n_rep times along the last (lane) axis.

    Uses O(log2(n_rep)) lane concatenations (a guaranteed-lowerable Mosaic
    path) instead of a 16-operand concat chain or a tile/reshape relayout.
    """
    reps = []
    block = x
    r = int(n_rep)
    while r > 0:
        if r & 1:
            reps.append(block)
        r >>= 1
        if r > 0:
            block = jnp.concatenate([block, block], axis=-1)
    return reps[0] if len(reps) == 1 else jnp.concatenate(reps, axis=-1)


# ---------------------------------------------------------------------------
# Fast path: softmax over a size-1 axis == 1.0, hence
#   output = broadcast_N(seq_emb) / sqrt(K)
# (numerically identical to the reference forward).  Output is produced
# lane-dense as (B, N*K); image_emb and the attention parameters are dead and
# are never DMA'd.
# ---------------------------------------------------------------------------
def _bcast_scale_kernel(seq_ref, out_ref):
    # seq_ref : (B, K)    VMEM
    # out_ref : (B, N*K)  VMEM, lane-dense (N*K is a multiple of 128)
    k_dim = seq_ref.shape[-1]
    n_rep = out_ref.shape[-1] // k_dim
    scaled = seq_ref[...] * (1.0 / math.sqrt(float(k_dim)))
    out_ref[...] = _replicate_lanes(scaled, n_rep).astype(out_ref.dtype)


# ---------------------------------------------------------------------------
# Faithful path: every op of the PyTorch forward, on the VPU/XLU/EUP only
# (no MXU -- all the reference matmuls are degenerate shapes).
# ---------------------------------------------------------------------------
def _img_text_attn_kernel(scal_ref, seq_ref, img_ref, w_ref, out_ref):
    # scal_ref : SMEM (3,)       = [b_img, b_seq, V_weight]
    # seq_ref  : VMEM (B, 1, K)
    # img_ref  : VMEM (B, N, K)
    # w_ref    : VMEM (2, K)     row 0 = img-proj weight, row 1 = seq-proj weight
    # out_ref  : VMEM (B, 1, N*K)  lane-dense output slab
    b_img = scal_ref[0]
    b_seq = scal_ref[1]
    v_w = scal_ref[2]

    k_dim = img_ref.shape[-1]
    n_reg = img_ref.shape[1]
    inv_sqrt_k = 1.0 / math.sqrt(float(k_dim))

    seq = seq_ref[...]                              # (B, 1, K)
    img = img_ref[...]                              # (B, N, K)
    w_img = w_ref[0:1, :].reshape(1, 1, k_dim)      # (1, 1, K) lane-dense
    w_seq = w_ref[1:2, :].reshape(1, 1, k_dim)      # (1, 1, K)

    # Linear(K, 1) + Tanh as a VPU multiply + XLU lane reduction: the
    # (., K) @ (K, 1) matmul is a degenerate MXU shape, so keep it off the MXU.
    p = jnp.tanh(jnp.sum(img * w_img, axis=-1, keepdims=True) + b_img)   # (B,N,1)
    q = jnp.tanh(jnp.sum(seq * w_seq, axis=-1, keepdims=True) + b_seq)   # (B,1,1)

    # p @ q^T, + q^T, @ V_weight -- all broadcast multiplies at these shapes.
    emb = (p * q + q) * v_w                                              # (B,N,1)

    # Softmax over the (size-1) last axis, kept faithful but *exact*:
    # exp(x - x) == 1 and the denominator is that single 1, so score == 1.0
    # bit-exactly.  approx=False -> no 2^-12 EUP-reciprocal error.
    m = jnp.max(emb, axis=-1, keepdims=True)
    e = jnp.exp(emb - m)
    denom = jnp.sum(e, axis=-1, keepdims=True)
    score = e * pl.reciprocal(denom, approx=False)                       # (B,N,1)

    # score @ seq_emb degenerates to per-region broadcast multiplies.  Assemble
    # the N per-region (B, 1, K) pieces into one lane-dense (B, 1, N*K) slab so
    # the store is an unmasked full-width vst rather than masked 32-lane
    # partial stores.
    scaled_seq = seq * inv_sqrt_k                                        # (B,1,K)
    pieces = [score[:, n:n + 1, :] * scaled_seq for n in range(n_reg)]
    out_ref[...] = jnp.concatenate(pieces, axis=-1).astype(out_ref.dtype)


@partial(jax.jit, static_argnames=("simplify_softmax1",))
def image_text_attention(seq_emb, image_emb, w_img, b_img, w_seq, b_seq,
                         v_weight, *, simplify_softmax1=True):
    """Pallas implementation of Image_Text_Attention.forward((seq_emb, image_emb)).

    simplify_softmax1=True (default) uses the mathematically identical
    reduction score == 1 (softmax over a length-1 axis); False executes every
    reference op inside the kernel (still MXU-free, exact arithmetic).
    """
    B, S, K = seq_emb.shape
    Bi, N, Ki = image_emb.shape
    assert B == Bi and K == Ki and S == 1, "reference forward requires S == 1"

    seq_emb = seq_emb.astype(jnp.float32)

    if simplify_softmax1:
        out_flat = pl.pallas_call(
            _bcast_scale_kernel,
            out_shape=jax.ShapeDtypeStruct((B, N * K), jnp.float32),
            in_specs=[pl.BlockSpec(memory_space=pltpu.VMEM)],
            out_specs=pl.BlockSpec(memory_space=pltpu.VMEM),
        )(seq_emb.reshape(B, K))
        return out_flat.reshape(B, N, K)

    image_emb = image_emb.astype(jnp.float32)
    # Lane-dense packed weights: row 0 = img projection, row 1 = seq projection.
    w_pack = jnp.concatenate(
        [w_img.reshape(1, K), w_seq.reshape(1, K)], axis=0
    ).astype(jnp.float32)
    # Tiny scalar parameters in SMEM: [b_img, b_seq, V_weight].
    scal = jnp.stack(
        [b_img.reshape(()), b_seq.reshape(()), v_weight.reshape(())]
    ).astype(jnp.float32)

    # Grid-less call: whole problem is one VMEM-resident tile, so no pipeline
    # machinery, no per-step overhead, no double buffers.
    out_flat = pl.pallas_call(
        _img_text_attn_kernel,
        out_shape=jax.ShapeDtypeStruct((B, 1, N * K), jnp.float32),
        in_specs=[
            pl.BlockSpec(memory_space=pltpu.SMEM),   # [b_img, b_seq, V_weight]
            pl.BlockSpec(memory_space=pltpu.VMEM),   # seq_emb (B, 1, K)
            pl.BlockSpec(memory_space=pltpu.VMEM),   # image_emb (B, N, K)
            pl.BlockSpec(memory_space=pltpu.VMEM),   # packed proj weights (2, K)
        ],
        out_specs=pl.BlockSpec(memory_space=pltpu.VMEM),
    )(scal, seq_emb, image_emb, w_pack)
    return out_flat.reshape(B, N, K)


def reference_forward(seq_emb, image_emb, w_img, b_img, w_seq, b_seq, v_weight):
    """Pure-JAX mirror of the PyTorch forward, for correctness checking."""
    K = seq_emb.shape[-1]
    p = jnp.tanh(image_emb @ w_img + b_img)          # (B, N, 1)
    q = jnp.tanh(seq_emb @ w_seq + b_seq)            # (B, 1, 1)
    emb = p @ jnp.swapaxes(q, 1, 2)                  # (B, N, 1)
    emb = emb + jnp.swapaxes(q, 2, 1)                # (B, N, 1)
    emb = emb @ v_weight                             # (B, N, 1) @ (1, 1)
    score = jax.nn.softmax(emb, axis=-1)
    out = score @ seq_emb                            # (B, N, K)
    return out / math.sqrt(float(K))


if __name__ == "__main__":
    # Small deterministic shapes consistent with the module:
    #   K (hidden) = 32, batch B = 2, N = 16 image regions, S = 1 sequence slot.
    B, N, S, K = 2, 16, 1, 32

    key = jax.random.PRNGKey(0)
    k_seq, k_img, k_wi, k_bi, k_ws, k_bs, k_v = jax.random.split(key, 7)

    seq_emb = jax.random.normal(k_seq, (B, S, K), dtype=jnp.float32)
    image_emb = jax.random.normal(k_img, (B, N, K), dtype=jnp.float32)

    # nn.Linear(K, 1): weight (1, K), bias (1,) -> stored transposed as (K, 1)
    bound = 1.0 / math.sqrt(K)
    w_img = jax.random.uniform(k_wi, (K, 1), minval=-bound, maxval=bound,
                               dtype=jnp.float32)
    b_img = jax.random.uniform(k_bi, (1,), minval=-bound, maxval=bound,
                               dtype=jnp.float32)
    w_seq = jax.random.uniform(k_ws, (K, 1), minval=-bound, maxval=bound,
                               dtype=jnp.float32)
    b_seq = jax.random.uniform(k_bs, (1,), minval=-bound, maxval=bound,
                               dtype=jnp.float32)
    # self.V_weight = nn.Parameter(torch.randn(1, 1))
    v_weight = jax.random.normal(k_v, (1, 1), dtype=jnp.float32)

    ref = jax.block_until_ready(
        reference_forward(seq_emb, image_emb, w_img, b_img, w_seq, b_seq,
                          v_weight))

    # Default (simplified) path.
    out_fast = image_text_attention(seq_emb, image_emb, w_img, b_img, w_seq,
                                    b_seq, v_weight, simplify_softmax1=True)
    out_fast = jax.block_until_ready(out_fast)
    assert out_fast.shape == (B, N, K)
    assert jnp.allclose(out_fast, ref, atol=1e-5, rtol=1e-5), (
        f"fast path mismatch: max abs err = {jnp.max(jnp.abs(out_fast - ref))}")

    # Faithful (all-ops, MXU-free, exact-reciprocal) path.
    out_full = image_text_attention(seq_emb, image_emb, w_img, b_img, w_seq,
                                    b_seq, v_weight, simplify_softmax1=False)
    out_full = jax.block_until_ready(out_full)
    assert out_full.shape == (B, N, K)
    assert jnp.allclose(out_full, ref, atol=1e-5, rtol=1e-5), (
        f"faithful path mismatch: max abs err = {jnp.max(jnp.abs(out_full - ref))}")

    print("KERNEL_OK")
</pallas_src>

<mosaic_0001>
module attributes {stable_mosaic.version = 11 : i64} {
  func.func @_bcast_scale_kernel(%arg0: memref<2x32xf32, #tpu.memory_space<vmem>>, %arg1: memref<2x512xf32, #tpu.memory_space<vmem>>) attributes {dimension_semantics = [], scalar_prefetch = 0 : i64, scratch_operands = 0 : i64, tpu.core_type = #tpu.core_type<tc>} {
    %c0 = arith.constant 0 : index
    %c0_0 = arith.constant 0 : index
    %0 = vector.load %arg0[%c0, %c0_0] : memref<2x32xf32, #tpu.memory_space<vmem>>, vector<2x32xf32>
    %cst = arith.constant 0.176776692 : f32
    %1 = vector.broadcast %cst : f32 to vector<2x32xf32>
    %2 = arith.mulf %0, %1 : vector<2x32xf32>
    %3 = tpu.concatenate %2, %2 in 1 : vector<2x32xf32>, vector<2x32xf32> -> vector<2x64xf32>
    %4 = tpu.concatenate %3, %3 in 1 : vector<2x64xf32>, vector<2x64xf32> -> vector<2x128xf32>
    %5 = tpu.concatenate %4, %4 in 1 : vector<2x128xf32>, vector<2x128xf32> -> vector<2x256xf32>
    %6 = tpu.concatenate %5, %5 in 1 : vector<2x256xf32>, vector<2x256xf32> -> vector<2x512xf32>
    %c0_1 = arith.constant 0 : index
    %c0_2 = arith.constant 0 : index
    %7 = vector.load %arg1[%c0_1, %c0_2] : memref<2x512xf32, #tpu.memory_space<vmem>>, vector<2x512xf32>
    tpu.vector_store %arg1[%c0_1, %c0_2], %6 {strides = array<i32>} : memref<2x512xf32, #tpu.memory_space<vmem>>, vector<2x512xf32>,
    return
  }
}

</mosaic_0001>

<bundles_post_ra>
// kernel: image_text_attention.1
= control target key start
LH: loop header
LB: loop body
LE: loop exit
PB: predicated region body
PF: predicated region fallthrough
CT: control target
= control target key end

     0   :  { %6 = vsyncpa [#allocation3], 0  ;;  %s77_s6 = smov [#allocation2]   ;;  %s97_s0 = inlined_call_operand.hbm [shape: f32[2,32], index: 0, kind: input, shape index: {}]   ;;  %s98_s1 = inlined_call_operand.vmem [shape: f32[2,512], index: 1, kind: output, shape index: {}]  }
   0x1   :  { %s13_s7 = sshll.u32 %s77_s6, 4  ;;  %s14_s7 = int_to_ptr.vmem [resolvable:$true] %s13_s7 }
   0x2   :  { %s63_s8 = scalar_lea.vmem %s14_s7, 32  ;;  %p68_p1 = scmp.lt.s32.totalorder %s14_s7, %s14_s7 }
   0x3   :  { %p64_p0 = scmp.ne.s32.totalorder %s14_s7, %s63_s8  ;;  %p69_p2 = scmp.lt.s32.totalorder %s63_s8, %s63_s8 }
   0x5   :  { %p70_p3 = por %p69_p2, %p68_p1 }
   0x7   :  { %p71_p4 = pnand %p70_p3, %p64_p0 }
   0x9   :  { %74 = shalt.err (!%p71_p4)
}
   0xa   :  { %16 = dma.hbm_to_vmem [thread:$0]  %s97_s0, 32, %s14_s7, [#allocation3]  }
   0xb   :  { %75 = dma.done.wait [#allocation3], 32  }
   0xc   :  { %76 = vsyncadd [#allocation3], 4294967264  ;;  %v20_v0 = vld [vmem:[#allocation2] sm:$0x3]  ;;  %s78_s11 = smov 32   ;;  %vm26_vm0 = vcmask 261120   ;;  %v39_v6 = vlaneseq }
   0xd   :  { %v21_v1 = vmul.f32 0.17677669, %v20_v0  ;;  %s79_s12 = smov 64   ;;  %v80_v4 = vmov 1983009808   ;;  %vm32_vm1 = vcmask 523264  }
   0xe   :  { %v37_v5 = vunpack.c.l.s4 %v80_v4  ;;  %v40_v8 = vshrl.u32 %v39_v6, 7 }
   0xf   :  { %23 = vrot.lane.b32.xlu0 %v21_v1, %s78_s11 }
  0x10   :  { %v38_v7 = vunpack.c.0.s8 %v37_v5 }
  0x12   :  { %v41_v9 = vsub.s32 %v38_v7, %v40_v8 }
  0x81   :  { %v24_v2 = vpop.permute.xlu0 %23 }
  0x82   :  { %v27_v3 = vsel %vm26_vm0, %v21_v1, %v24_v2 }
  0x83   :  { %29 = vrot.lane.b32.xlu0 %v27_v3, %s79_s12 }
  0xf5   :  { %v30_v10 = vpop.permute.xlu0 %29 }
  0xf6   :  { %v33_v11 = vsel %vm32_vm1, %v27_v3, %v30_v10 }
  0xf7   :  { %v35_v12 = vcombine.low %v33_v11, %v33_v11 }
  0xf9   :  { %v42_v13 = vrot.slane %v35_v12, %v41_v9 }
  0xfb   :  { %v43_v14 = vcombine.low %v42_v13, %v42_v13 }
  0xfd   :  { %45 = vst [vmem:[%s98_s1] sm:$0xff] %v43_v14 }
  0xfe   :  { %50 = vsyncpa [#allocation3], 1 }

</bundles_post_ra>
